<compile_context>
chip_gen: v5e
topology: v5e:2x2
jax: 0.10.0
libtpu: 0.0.40
codegen_flags: <defaults>
</compile_context>

<pallas_src>
import functools
import math

import jax
import jax.numpy as jnp
from jax import lax
from jax.experimental import pallas as pl
from jax.experimental.pallas import tpu as pltpu

# Python float on purpose: a jnp scalar here becomes a captured kernel constant.
_NEG_BIG = -1e30


# ----------------------------------------------------------------------------
# Generation-aware scoped-VMEM limit
# ----------------------------------------------------------------------------
@functools.lru_cache(maxsize=None)
def _vmem_limit_bytes():
    """~100 MiB on v5e/v6e (128 MiB VMEM), ~56 MiB on v7x (64 MiB VMEM)."""
    cap = 128 * 1024 * 1024
    try:
        cap = int(pltpu.get_tpu_info().vmem_capacity_bytes)
    except Exception:
        pass  # no live TPU query available -> assume the larger generations
    return max(min(cap - 8 * 1024 * 1024, 100 * 1024 * 1024), 32 * 1024 * 1024)


# ----------------------------------------------------------------------------
# Shared math helpers
# ----------------------------------------------------------------------------
def _layernorm(x, g, b, eps=1e-5):
    mu = jnp.mean(x, axis=-1, keepdims=True)
    var = jnp.mean((x - mu) ** 2, axis=-1, keepdims=True)
    return (x - mu) * lax.rsqrt(var + eps) * g + b


def _mm(a, b):
    """bf16 x bf16 -> f32 MXU matmul with f32 accumulation."""
    return jnp.dot(a.astype(jnp.bfloat16), b.astype(jnp.bfloat16),
                   preferred_element_type=jnp.float32)


# ----------------------------------------------------------------------------
# Pallas kernels
# ----------------------------------------------------------------------------
def transformer_layer_kernel(
    x_ref,
    ln1g_ref, ln1b_ref,
    wqkv_ref, bqkv_ref,
    wo_ref, bo_ref,
    ln2g_ref, ln2b_ref,
    w1_ref, b1_ref,
    w2_ref, b2_ref,
    o_ref,
    *, n_heads, q_block,
):
    """One full pre-LN transformer block for a single batch element."""
    x = x_ref[0]                       # (T, D) f32 residual stream
    T, D = x.shape
    H = n_heads
    hd = D // H
    scale = 1.0 / math.sqrt(hd)
    TQ = q_block
    n_q = T // TQ

    # ---- QKV projection for the whole sequence (K/V need every row) ----
    xn = _layernorm(x, ln1g_ref[...], ln1b_ref[...])
    qkv = _mm(xn, wqkv_ref[...]) + bqkv_ref[...]            # (T, 3D) f32

    # torch view(B,T,3,H,hd): columns ordered (qkv, head, dim).  One minor
    # split + one bf16 major-dim transpose yields head-leading (3H, T, hd)
    # slabs for leading-batch MXU einsums (no per-head loop / concatenate).
    qkv_b = qkv.astype(jnp.bfloat16).reshape(T, 3 * H, hd)
    qkv_b = jnp.transpose(qkv_b, (1, 0, 2))                  # (3H, T, hd) bf16
    q = qkv_b[:H]                                            # (H, T, hd)
    k = qkv_b[H:2 * H]
    v = qkv_b[2 * H:]

    # ---- flash-style query tiling with causal KV-prefix skipping ----
    # Fully-masked KV blocks are never touched: each query block only reads the
    # first (qb+1)*TQ keys/values, so attention work and exp count are halved.
    for qb in range(n_q):
        r0 = qb * TQ
        kv_len = r0 + TQ                                     # static per block

        q_blk = q[:, r0:r0 + TQ, :]                          # (H, TQ, hd)
        k_pre = k[:, :kv_len, :]                             # (H, kv_len, hd)
        v_pre = v[:, :kv_len, :]

        s = jnp.einsum("hqd,hkd->hqk", q_blk, k_pre,
                       preferred_element_type=jnp.float32) * scale
        # Mask is only "active" on the diagonal TQ columns, but the compare +
        # select over the prefix is cheap VPU work next to the exp below.
        row = lax.broadcasted_iota(jnp.int32, (TQ, kv_len), 0) + r0
        col = lax.broadcasted_iota(jnp.int32, (TQ, kv_len), 1)
        s = jnp.where((row >= col)[None], s, _NEG_BIG)

        s = s - jnp.max(s, axis=-1, keepdims=True)
        p = jnp.exp(s)
        denom = jnp.sum(p, axis=-1, keepdims=True)           # (H, TQ, 1)
        p = p * (1.0 / denom)       # tiny divide; big tensor only multiplies

        o_blk = jnp.einsum("hqk,hkd->hqd", p.astype(jnp.bfloat16), v_pre,
                           preferred_element_type=jnp.float32)   # (H, TQ, hd)
        # Back to row-major (TQ, D) with head-major columns for the out proj
        # (full-D contracting dim keeps the MXU well filled).
        attn_blk = jnp.transpose(o_blk.astype(jnp.bfloat16), (1, 0, 2))
        attn_blk = attn_blk.reshape(TQ, D)

        x_blk = x[r0:r0 + TQ] + _mm(attn_blk, wo_ref[...]) + bo_ref[...]

        # ---- feed-forward, fused into the same row block ----
        xn2 = _layernorm(x_blk, ln2g_ref[...], ln2b_ref[...])
        h1 = jnp.maximum(_mm(xn2, w1_ref[...]) + b1_ref[...], 0.0)   # ReLU
        out_blk = x_blk + _mm(h1, w2_ref[...]) + b2_ref[...]

        o_ref[0, r0:r0 + TQ, :] = out_blk                    # lane-dense store


def linear_kernel(x_ref, w_ref, b_ref, o_ref, acc_ref):
    """Tiled y = x @ W + b with f32 VMEM accumulator over the K grid axis."""
    @pl.when(pl.program_id(2) == 0)
    def _():
        acc_ref[...] = jnp.zeros_like(acc_ref)

    # x and W are already bf16 (cast once in the wrapper, not per grid step).
    acc_ref[...] += jnp.dot(x_ref[...], w_ref[...],
                            preferred_element_type=jnp.float32)

    @pl.when(pl.program_id(2) == pl.num_programs(2) - 1)
    def _():
        o_ref[...] = acc_ref[...] + b_ref[...]


# ----------------------------------------------------------------------------
# Wrappers
# ----------------------------------------------------------------------------
def _pick_q_block(T):
    """>=256-wide query tiles where possible (256-wide MXU on v6e/v7x)."""
    for cand in (256, 128):
        if T > cand and T % cand == 0:
            return cand
    return T


def run_transformer_layer(x, layer_params, n_heads, q_block):
    """x: (B, T, D) float32.  layer_params: tuple of 12 arrays (see kernel)."""
    B, T, D = x.shape
    assert T % q_block == 0

    in_specs = [pl.BlockSpec((1, T, D), lambda b: (b, 0, 0))]
    for p in layer_params:
        # Constant index_map: weights stay resident, only fetched once.
        # TODO(synk): pipeline_mode=pl.Buffered(1) would also drop their unused
        #             second buffer (key v7x VMEM saving); deferred until its
        #             pallas_call lowering support is confirmed everywhere.
        in_specs.append(pl.BlockSpec(p.shape, lambda b, _n=p.ndim: (0,) * _n))
    out_spec = pl.BlockSpec((1, T, D), lambda b: (b, 0, 0))

    weight_bytes = sum(int(p.size) * p.dtype.itemsize for p in layer_params)
    cost = pl.CostEstimate(
        flops=int(B * (24 * T * D * D + 2 * T * T * D)),       # causal ~halves attn
        transcendentals=int(B * (n_heads * T * T // 2 + 2 * T)),
        bytes_accessed=int(2 * x.size * x.dtype.itemsize + weight_bytes),
    )

    # TODO(synk): add a second "parallel" grid axis over query tiles so v7x's
    #             two TensorCores are both busy when B is 1 / odd.
    return pl.pallas_call(
        functools.partial(transformer_layer_kernel,
                          n_heads=n_heads, q_block=q_block),
        grid=(B,),
        in_specs=in_specs,
        out_specs=out_spec,
        out_shape=jax.ShapeDtypeStruct((B, T, D), jnp.float32),
        compiler_params=pltpu.CompilerParams(
            dimension_semantics=("parallel",),
            vmem_limit_bytes=_vmem_limit_bytes(),
        ),
        cost_estimate=cost,
    )(x, *layer_params)


# Vocab-projection tiles: v7x-safe (acc 512x1024 f32 = 2 MiB) and near-optimal
# on v5e/v6e as well; ragged dims are zero-padded to this grid.
_TM, _TN, _TK = 512, 1024, 1024


def _round_up(n, m):
    return ((n + m - 1) // m) * m


def _tile_and_pad(dim, preferred):
    """Return (tile, padded_dim): full-extent block for small dims, otherwise
    `preferred`-sized tiles with the dim padded up to a multiple of it."""
    if dim <= preferred:
        return dim, dim
    return preferred, _round_up(dim, preferred)


def run_linear(x2d, w, b):
    """Tiled y = x @ W + b.  x2d: (M, K) bf16, w: (K, N) bf16, b: (1, N) f32."""
    M, K = x2d.shape
    N = w.shape[1]
    TM, Mp = _tile_and_pad(M, _TM)
    TN, Np = _tile_and_pad(N, _TN)
    TK, Kp = _tile_and_pad(K, _TK)

    # Zero-pad ragged dims (e.g. vocab=50257) to the tile grid instead of
    # falling back to a huge full-extent weight block.
    if (Mp, Kp) != (M, K):
        x2d = jnp.pad(x2d, ((0, Mp - M), (0, Kp - K)))
    if (Kp, Np) != (K, N):
        w = jnp.pad(w, ((0, Kp - K), (0, Np - N)))
    if Np != N:
        b = jnp.pad(b, ((0, 0), (0, Np - N)))

    grid = (Mp // TM, Np // TN, Kp // TK)
    cost = pl.CostEstimate(
        flops=int(2 * Mp * Np * Kp),
        transcendentals=0,
        bytes_accessed=int(Mp * Kp * 2 * (Np // TN)
                           + Kp * Np * 2 * (Mp // TM)
                           + Mp * Np * 4),
    )

    out = pl.pallas_call(
        linear_kernel,
        grid=grid,
        in_specs=[
            pl.BlockSpec((TM, TK), lambda i, j, k: (i, k)),
            pl.BlockSpec((TK, TN), lambda i, j, k: (k, j)),
            pl.BlockSpec((1, TN), lambda i, j, k: (0, j)),
        ],
        out_specs=pl.BlockSpec((TM, TN), lambda i, j, k: (i, j)),
        out_shape=jax.ShapeDtypeStruct((Mp, Np), jnp.float32),
        scratch_shapes=[pltpu.VMEM((TM, TN), jnp.float32)],
        compiler_params=pltpu.CompilerParams(
            dimension_semantics=("parallel", "parallel", "arbitrary"),
            vmem_limit_bytes=_vmem_limit_bytes(),
        ),
        cost_estimate=cost,
    )(x2d, w, b)

    if (Mp, Np) != (M, N):
        out = out[:M, :N]
    return out


def gpt_forward(tokens, params, n_heads, target=None):
    """tokens: (B, T) int32 -> (logits (B, T, V), loss or None)."""
    B, T = tokens.shape
    # TODO(synk): fuse the embedding gather + positional add into layer 0
    #             (scalar-prefetched token ids) to save one (B,T,D) HBM round
    #             trip; kept as XLA-fused gather+add glue for now.
    tok = jnp.take(params["tok_emb"], tokens, axis=0)          # (B, T, D)
    pos = params["pos_emb"][:T]                                # (T, D)
    x = tok + pos[None, :, :]

    q_block = _pick_q_block(T)
    for lp in params["layers"]:
        x = run_transformer_layer(x, lp, n_heads, q_block)

    D = x.shape[-1]
    V = params["w_out"].shape[1]
    # Pre-cast the re-streamed activations to bf16 once (halves x DMA traffic
    # across the N/TN passes of the vocab projection).
    logits = run_linear(x.reshape(B * T, D).astype(jnp.bfloat16),
                        params["w_out"], params["b_out"])
    logits = logits.reshape(B, T, V)

    loss = None
    if target is not None:
        # cross-entropy glue (plain JAX), matching nn.CrossEntropyLoss (mean)
        lf = logits.reshape(-1, V)
        tf = target.reshape(-1)
        lse = jax.nn.logsumexp(lf, axis=-1)
        nll = lse - jnp.take_along_axis(lf, tf[:, None], axis=-1)[:, 0]
        loss = jnp.mean(nll)
    return logits, loss


# ----------------------------------------------------------------------------
# Deterministic parameter init (matmul weights bf16, biases/LN/embeddings f32)
# ----------------------------------------------------------------------------
def init_params(key, vocab_size, context_len, n_layers, in_dim, n_heads):
    def nrm(k, shape, scale=0.02, dtype=jnp.float32):
        return (scale * jax.random.normal(k, shape)).astype(dtype)

    bf16 = jnp.bfloat16
    keys = jax.random.split(key, 4 + n_layers)
    params = {
        "tok_emb": nrm(keys[0], (vocab_size, in_dim)),
        "pos_emb": nrm(keys[1], (context_len, in_dim)),
        "w_out": nrm(keys[2], (in_dim, vocab_size), dtype=bf16),
        "b_out": jnp.zeros((1, vocab_size), jnp.float32),
        "layers": [],
    }
    for li in range(n_layers):
        lk = jax.random.split(keys[4 + li], 6)
        layer = (
            jnp.ones((1, in_dim), jnp.float32),                 # ln1 gamma
            jnp.zeros((1, in_dim), jnp.float32),                # ln1 beta
            nrm(lk[0], (in_dim, 3 * in_dim), dtype=bf16),       # w_qkv
            nrm(lk[1], (1, 3 * in_dim), 0.01),                  # b_qkv
            nrm(lk[2], (in_dim, in_dim), dtype=bf16),           # w_out_proj
            jnp.zeros((1, in_dim), jnp.float32),                # b_out_proj
            jnp.ones((1, in_dim), jnp.float32),                 # ln2 gamma
            jnp.zeros((1, in_dim), jnp.float32),                # ln2 beta
            nrm(lk[3], (in_dim, 4 * in_dim), dtype=bf16),       # w_ff1
            nrm(lk[4], (1, 4 * in_dim), 0.01),                  # b_ff1
            nrm(lk[5], (4 * in_dim, in_dim), dtype=bf16),       # w_ff2
            jnp.zeros((1, in_dim), jnp.float32),                # b_ff2
        )
        params["layers"].append(layer)
    return params


# ----------------------------------------------------------------------------
# Pure-JAX reference (mirrors the bf16 casts so tolerances stay tight)
# ----------------------------------------------------------------------------
def _ref_layernorm(x, g, b, eps=1e-5):
    mu = x.mean(-1, keepdims=True)
    var = ((x - mu) ** 2).mean(-1, keepdims=True)
    return (x - mu) / jnp.sqrt(var + eps) * g + b


def _ref_mm(a, b):
    return jnp.einsum("...d,df->...f", a.astype(jnp.bfloat16),
                      b.astype(jnp.bfloat16),
                      preferred_element_type=jnp.float32)


def ref_forward(tokens, params, n_heads):
    B, T = tokens.shape
    x = params["tok_emb"][tokens] + params["pos_emb"][jnp.arange(T)][None]
    D = x.shape[-1]
    hd = D // n_heads
    for (g1, b1, wqkv, bqkv, wo, bo, g2, b2, w1, bb1, w2, bb2) in params["layers"]:
        xn = _ref_layernorm(x, g1, b1)
        qkv = _ref_mm(xn, wqkv) + bqkv                           # (B,T,3D)
        qkv = qkv.reshape(B, T, 3, n_heads, hd).transpose(2, 0, 3, 1, 4)
        q, k, v = qkv[0], qkv[1], qkv[2]                         # (B,H,T,hd)
        s = jnp.einsum("bhqd,bhkd->bhqk", q.astype(jnp.bfloat16),
                       k.astype(jnp.bfloat16),
                       preferred_element_type=jnp.float32) / math.sqrt(hd)
        mask = jnp.tril(jnp.ones((T, T), bool))
        s = jnp.where(mask, s, _NEG_BIG)
        p = jax.nn.softmax(s, axis=-1)
        a = jnp.einsum("bhqk,bhkd->bhqd", p.astype(jnp.bfloat16),
                       v.astype(jnp.bfloat16),
                       preferred_element_type=jnp.float32)
        a = a.transpose(0, 2, 1, 3).reshape(B, T, D)
        x = x + _ref_mm(a, wo) + bo
        xn2 = _ref_layernorm(x, g2, b2)
        h = jnp.maximum(_ref_mm(xn2, w1) + bb1, 0.0)
        x = x + _ref_mm(h, w2) + bb2
    return _ref_mm(x, params["w_out"]) + params["b_out"]


# ----------------------------------------------------------------------------
if __name__ == "__main__":
    VOCAB, CTX, N_LAYERS, D, HEADS = 64, 16, 2, 32, 4
    B, T = 2, 8

    key = jax.random.PRNGKey(0)
    pkey, tkey = jax.random.split(key)
    params = init_params(pkey, VOCAB, CTX, N_LAYERS, D, HEADS)
    tokens = jax.random.randint(tkey, (B, T), 0, VOCAB, dtype=jnp.int32)

    logits, loss = gpt_forward(tokens, params, HEADS, target=None)
    logits = jax.block_until_ready(logits)
    assert logits.shape == (B, T, VOCAB) and logits.dtype == jnp.float32

    ref = jax.block_until_ready(ref_forward(tokens, params, HEADS))
    max_err = float(jnp.max(jnp.abs(logits - ref)))
    assert jnp.allclose(logits, ref, atol=3e-3, rtol=3e-2), max_err

    # also exercise the (logits, loss) path
    _, loss = gpt_forward(tokens, params, HEADS, target=tokens)
    loss = jax.block_until_ready(loss)
    assert loss.shape == ()

    print("KERNEL_OK")
</pallas_src>

<mosaic_0001>
module attributes {stable_mosaic.version = 11 : i64} {
  func.func @transformer_layer_kernel(%arg0: i32, %arg1: memref<1x8x32xf32, #tpu.memory_space<vmem>>, %arg2: memref<1x32xf32, #tpu.memory_space<vmem>>, %arg3: memref<1x32xf32, #tpu.memory_space<vmem>>, %arg4: memref<32x96xbf16, #tpu.memory_space<vmem>>, %arg5: memref<1x96xf32, #tpu.memory_space<vmem>>, %arg6: memref<32x32xbf16, #tpu.memory_space<vmem>>, %arg7: memref<1x32xf32, #tpu.memory_space<vmem>>, %arg8: memref<1x32xf32, #tpu.memory_space<vmem>>, %arg9: memref<1x32xf32, #tpu.memory_space<vmem>>, %arg10: memref<32x128xbf16, #tpu.memory_space<vmem>>, %arg11: memref<1x128xf32, #tpu.memory_space<vmem>>, %arg12: memref<128x32xbf16, #tpu.memory_space<vmem>>, %arg13: memref<1x32xf32, #tpu.memory_space<vmem>>, %arg14: memref<1x8x32xf32, #tpu.memory_space<vmem>>) attributes {dimension_semantics = [#tpu.dimension_semantics<parallel>], iteration_bounds = array<i64: 2>, scalar_prefetch = 0 : i64, scratch_operands = 0 : i64, tpu.core_type = #tpu.core_type<tc>, window_params = [{transform_indices = @transform_0, window_bounds = array<i64: 1, 8, 32>}, {pipeline_mode = #tpu.pipeline_mode<synchronous>, transform_indices = @transform_1, window_bounds = array<i64: 1, 32>}, {pipeline_mode = #tpu.pipeline_mode<synchronous>, transform_indices = @transform_2, window_bounds = array<i64: 1, 32>}, {pipeline_mode = #tpu.pipeline_mode<synchronous>, transform_indices = @transform_3, window_bounds = array<i64: 32, 96>}, {pipeline_mode = #tpu.pipeline_mode<synchronous>, transform_indices = @transform_4, window_bounds = array<i64: 1, 96>}, {pipeline_mode = #tpu.pipeline_mode<synchronous>, transform_indices = @transform_5, window_bounds = array<i64: 32, 32>}, {pipeline_mode = #tpu.pipeline_mode<synchronous>, transform_indices = @transform_6, window_bounds = array<i64: 1, 32>}, {pipeline_mode = #tpu.pipeline_mode<synchronous>, transform_indices = @transform_7, window_bounds = array<i64: 1, 32>}, {pipeline_mode = #tpu.pipeline_mode<synchronous>, transform_indices = @transform_8, window_bounds = array<i64: 1, 32>}, {pipeline_mode = #tpu.pipeline_mode<synchronous>, transform_indices = @transform_9, window_bounds = array<i64: 32, 128>}, {pipeline_mode = #tpu.pipeline_mode<synchronous>, transform_indices = @transform_10, window_bounds = array<i64: 1, 128>}, {pipeline_mode = #tpu.pipeline_mode<synchronous>, transform_indices = @transform_11, window_bounds = array<i64: 128, 32>}, {pipeline_mode = #tpu.pipeline_mode<synchronous>, transform_indices = @transform_12, window_bounds = array<i64: 1, 32>}, {transform_indices = @transform_13, window_bounds = array<i64: 1, 8, 32>}]} {
    %c0 = arith.constant 0 : index
    %c0_0 = arith.constant 0 : index
    %c0_1 = arith.constant 0 : index
    %0 = vector.load %arg1[%c0, %c0_0, %c0_1] : memref<1x8x32xf32, #tpu.memory_space<vmem>>, vector<1x8x32xf32>
    %1 = vector.shape_cast %0 : vector<1x8x32xf32> to vector<8x32xf32>
    %c0_2 = arith.constant 0 : index
    %c0_3 = arith.constant 0 : index
    %2 = vector.load %arg2[%c0_2, %c0_3] : memref<1x32xf32, #tpu.memory_space<vmem>>, vector<1x32xf32>
    %c0_4 = arith.constant 0 : index
    %c0_5 = arith.constant 0 : index
    %3 = vector.load %arg3[%c0_4, %c0_5] : memref<1x32xf32, #tpu.memory_space<vmem>>, vector<1x32xf32>
    %cst = arith.constant dense<0.000000e+00> : vector<8xf32>
    %4 = vector.multi_reduction <add>, %1, %cst [1] : vector<8x32xf32> to vector<8xf32>
    %5 = vector.shape_cast %4 : vector<8xf32> to vector<8x1xf32>
    %cst_6 = arith.constant 3.200000e+01 : f32
    %6 = vector.broadcast %cst_6 : f32 to vector<8x1xf32>
    %7 = arith.divf %5, %6 : vector<8x1xf32>
    %8 = vector.broadcast %7 : vector<8x1xf32> to vector<8x32xf32>
    %9 = arith.subf %1, %8 : vector<8x32xf32>
    %10 = arith.mulf %9, %9 : vector<8x32xf32>
    %cst_7 = arith.constant dense<0.000000e+00> : vector<8xf32>
    %11 = vector.multi_reduction <add>, %10, %cst_7 [1] : vector<8x32xf32> to vector<8xf32>
    %12 = vector.shape_cast %11 : vector<8xf32> to vector<8x1xf32>
    %cst_8 = arith.constant 3.200000e+01 : f32
    %13 = vector.broadcast %cst_8 : f32 to vector<8x1xf32>
    %14 = arith.divf %12, %13 : vector<8x1xf32>
    %15 = vector.broadcast %7 : vector<8x1xf32> to vector<8x32xf32>
    %16 = arith.subf %1, %15 : vector<8x32xf32>
    %cst_9 = arith.constant 9.99999974E-6 : f32
    %17 = vector.broadcast %cst_9 : f32 to vector<8x1xf32>
    %18 = arith.addf %14, %17 : vector<8x1xf32>
    %19 = math.rsqrt %18 : vector<8x1xf32>
    %20 = vector.broadcast %19 : vector<8x1xf32> to vector<8x32xf32>
    %21 = arith.mulf %16, %20 : vector<8x32xf32>
    %22 = vector.broadcast %2 : vector<1x32xf32> to vector<8x32xf32>
    %23 = arith.mulf %21, %22 : vector<8x32xf32>
    %24 = vector.broadcast %3 : vector<1x32xf32> to vector<8x32xf32>
    %25 = arith.addf %23, %24 : vector<8x32xf32>
    %c0_10 = arith.constant 0 : index
    %c0_11 = arith.constant 0 : index
    %26 = vector.load %arg4[%c0_10, %c0_11] : memref<32x96xbf16, #tpu.memory_space<vmem>>, vector<32x96xbf16>
    %27 = arith.truncf %25 : vector<8x32xf32> to vector<8x32xbf16>
    %cst_12 = arith.constant dense<0.000000e+00> : vector<8x96xf32>
    %28 = tpu.matmul %27, %26, %cst_12 {dimension_numbers = #tpu.dot_dimension_numbers<[1], [0], [0], [1], [0, 0, 1, 1], [], []>} : vector<8x32xbf16>, vector<32x96xbf16>, vector<8x96xf32> -> vector<8x96xf32>
    %c0_13 = arith.constant 0 : index
    %c0_14 = arith.constant 0 : index
    %29 = vector.load %arg5[%c0_13, %c0_14] : memref<1x96xf32, #tpu.memory_space<vmem>>, vector<1x96xf32>
    %30 = vector.broadcast %29 : vector<1x96xf32> to vector<8x96xf32>
    %31 = arith.addf %28, %30 : vector<8x96xf32>
    %32 = arith.truncf %31 : vector<8x96xf32> to vector<8x96xbf16>
    %33 = vector.shape_cast %32 : vector<8x96xbf16> to vector<8x12x8xbf16>
    %34 = tpu.transpose %33, [1, 0, 2] : vector<8x12x8xbf16> -> vector<12x8x8xbf16>
    %35 = vector.extract_strided_slice %34 {offsets = [0, 0, 0], sizes = [4, 8, 8], strides = [1, 1, 1]} : vector<12x8x8xbf16> to vector<4x8x8xbf16>
    %36 = vector.extract_strided_slice %34 {offsets = [4, 0, 0], sizes = [4, 8, 8], strides = [1, 1, 1]} : vector<12x8x8xbf16> to vector<4x8x8xbf16>
    %37 = vector.extract_strided_slice %34 {offsets = [8, 0, 0], sizes = [4, 8, 8], strides = [1, 1, 1]} : vector<12x8x8xbf16> to vector<4x8x8xbf16>
    "tpu.trace_start"() <{level = 10 : i32, message = "hqd,hkd->hqk"}> : () -> ()
    %cst_15 = arith.constant dense<0.000000e+00> : vector<4x8x8xf32>
    %38 = tpu.matmul %35, %36, %cst_15 {dimension_numbers = #tpu.dot_dimension_numbers<[2], [2], [1], [1], [0, 0, 0, 1, 1, 1], [0], [0]>} : vector<4x8x8xbf16>, vector<4x8x8xbf16>, vector<4x8x8xf32> -> vector<4x8x8xf32>
    "tpu.trace_stop"() : () -> ()
    %cst_16 = arith.constant 0.353553385 : f32
    %39 = vector.broadcast %cst_16 : f32 to vector<4x8x8xf32>
    %40 = arith.mulf %38, %39 : vector<4x8x8xf32>
    %41 = tpu.iota {dimensions = array<i32: 0>} : vector<8x8xi32>
    %c0_i32 = arith.constant 0 : i32
    %42 = vector.broadcast %c0_i32 : i32 to vector<8x8xi32>
    %43 = arith.addi %41, %42 : vector<8x8xi32>
    %44 = tpu.iota {dimensions = array<i32: 1>} : vector<8x8xi32>
    %45 = arith.cmpi sge, %43, %44 : vector<8x8xi32>
    %46 = vector.shape_cast %45 : vector<8x8xi1> to vector<1x8x8xi1>
    %cst_17 = arith.constant -1.000000e+30 : f32
    %47 = vector.shape_cast %46 : vector<1x8x8xi1> to vector<1x8x8xi1>
    %48 = vector.broadcast %47 : vector<1x8x8xi1> to vector<4x8x8xi1>
    %49 = vector.broadcast %cst_17 : f32 to vector<4x8x8xf32>
    %50 = arith.select %48, %40, %49 : vector<4x8x8xi1>, vector<4x8x8xf32>
    %cst_18 = arith.constant dense<0xFF800000> : vector<4x8xf32>
    %51 = vector.multi_reduction <maximumf>, %50, %cst_18 [2] : vector<4x8x8xf32> to vector<4x8xf32>
    %52 = vector.shape_cast %51 : vector<4x8xf32> to vector<4x8x1xf32>
    %53 = vector.broadcast %52 : vector<4x8x1xf32> to vector<4x8x8xf32>
    %54 = arith.subf %50, %53 : vector<4x8x8xf32>
    %55 = math.exp %54 : vector<4x8x8xf32>
    %cst_19 = arith.constant dense<0.000000e+00> : vector<4x8xf32>
    %56 = vector.multi_reduction <add>, %55, %cst_19 [2] : vector<4x8x8xf32> to vector<4x8xf32>
    %57 = vector.shape_cast %56 : vector<4x8xf32> to vector<4x8x1xf32>
    %cst_20 = arith.constant 1.000000e+00 : f32
    %58 = vector.broadcast %cst_20 : f32 to vector<4x8x1xf32>
    %59 = arith.divf %58, %57 : vector<4x8x1xf32>
    %60 = vector.broadcast %59 : vector<4x8x1xf32> to vector<4x8x8xf32>
    %61 = arith.mulf %55, %60 : vector<4x8x8xf32>
    %62 = arith.truncf %61 : vector<4x8x8xf32> to vector<4x8x8xbf16>
    "tpu.trace_start"() <{level = 10 : i32, message = "hqk,hkd->hqd"}> : () -> ()
    %cst_21 = arith.constant dense<0.000000e+00> : vector<4x8x8xf32>
    %63 = tpu.matmul %62, %37, %cst_21 {dimension_numbers = #tpu.dot_dimension_numbers<[2], [1], [1], [2], [0, 0, 0, 1, 1, 2], [0], [0]>} : vector<4x8x8xbf16>, vector<4x8x8xbf16>, vector<4x8x8xf32> -> vector<4x8x8xf32>
    "tpu.trace_stop"() : () -> ()
    %64 = arith.truncf %63 : vector<4x8x8xf32> to vector<4x8x8xbf16>
    %65 = tpu.transpose %64, [1, 0, 2] : vector<4x8x8xbf16> -> vector<8x4x8xbf16>
    %66 = vector.shape_cast %65 : vector<8x4x8xbf16> to vector<8x32xbf16>
    %c0_22 = arith.constant 0 : index
    %c0_23 = arith.constant 0 : index
    %67 = vector.load %arg6[%c0_22, %c0_23] : memref<32x32xbf16, #tpu.memory_space<vmem>>, vector<32x32xbf16>
    %cst_24 = arith.constant dense<0.000000e+00> : vector<8x32xf32>
    %68 = tpu.matmul %66, %67, %cst_24 {dimension_numbers = #tpu.dot_dimension_numbers<[1], [0], [0], [1], [0, 0, 1, 1], [], []>} : vector<8x32xbf16>, vector<32x32xbf16>, vector<8x32xf32> -> vector<8x32xf32>
    %69 = arith.addf %1, %68 : vector<8x32xf32>
    %c0_25 = arith.constant 0 : index
    %c0_26 = arith.constant 0 : index
    %70 = vector.load %arg7[%c0_25, %c0_26] : memref<1x32xf32, #tpu.memory_space<vmem>>, vector<1x32xf32>
    %71 = vector.broadcast %70 : vector<1x32xf32> to vector<8x32xf32>
    %72 = arith.addf %69, %71 : vector<8x32xf32>
    %c0_27 = arith.constant 0 : index
    %c0_28 = arith.constant 0 : index
    %73 = vector.load %arg8[%c0_27, %c0_28] : memref<1x32xf32, #tpu.memory_space<vmem>>, vector<1x32xf32>
    %c0_29 = arith.constant 0 : index
    %c0_30 = arith.constant 0 : index
    %74 = vector.load %arg9[%c0_29, %c0_30] : memref<1x32xf32, #tpu.memory_space<vmem>>, vector<1x32xf32>
    %cst_31 = arith.constant dense<0.000000e+00> : vector<8xf32>
    %75 = vector.multi_reduction <add>, %72, %cst_31 [1] : vector<8x32xf32> to vector<8xf32>
    %76 = vector.shape_cast %75 : vector<8xf32> to vector<8x1xf32>
    %cst_32 = arith.constant 3.200000e+01 : f32
    %77 = vector.broadcast %cst_32 : f32 to vector<8x1xf32>
    %78 = arith.divf %76, %77 : vector<8x1xf32>
    %79 = vector.broadcast %78 : vector<8x1xf32> to vector<8x32xf32>
    %80 = arith.subf %72, %79 : vector<8x32xf32>
    %81 = arith.mulf %80, %80 : vector<8x32xf32>
    %cst_33 = arith.constant dense<0.000000e+00> : vector<8xf32>
    %82 = vector.multi_reduction <add>, %81, %cst_33 [1] : vector<8x32xf32> to vector<8xf32>
    %83 = vector.shape_cast %82 : vector<8xf32> to vector<8x1xf32>
    %cst_34 = arith.constant 3.200000e+01 : f32
    %84 = vector.broadcast %cst_34 : f32 to vector<8x1xf32>
    %85 = arith.divf %83, %84 : vector<8x1xf32>
    %86 = vector.broadcast %78 : vector<8x1xf32> to vector<8x32xf32>
    %87 = arith.subf %72, %86 : vector<8x32xf32>
    %cst_35 = arith.constant 9.99999974E-6 : f32
    %88 = vector.broadcast %cst_35 : f32 to vector<8x1xf32>
    %89 = arith.addf %85, %88 : vector<8x1xf32>
    %90 = math.rsqrt %89 : vector<8x1xf32>
    %91 = vector.broadcast %90 : vector<8x1xf32> to vector<8x32xf32>
    %92 = arith.mulf %87, %91 : vector<8x32xf32>
    %93 = vector.broadcast %73 : vector<1x32xf32> to vector<8x32xf32>
    %94 = arith.mulf %92, %93 : vector<8x32xf32>
    %95 = vector.broadcast %74 : vector<1x32xf32> to vector<8x32xf32>
    %96 = arith.addf %94, %95 : vector<8x32xf32>
    %c0_36 = arith.constant 0 : index
    %c0_37 = arith.constant 0 : index
    %97 = vector.load %arg10[%c0_36, %c0_37] : memref<32x128xbf16, #tpu.memory_space<vmem>>, vector<32x128xbf16>
    %98 = arith.truncf %96 : vector<8x32xf32> to vector<8x32xbf16>
    %cst_38 = arith.constant dense<0.000000e+00> : vector<8x128xf32>
    %99 = tpu.matmul %98, %97, %cst_38 {dimension_numbers = #tpu.dot_dimension_numbers<[1], [0], [0], [1], [0, 0, 1, 1], [], []>} : vector<8x32xbf16>, vector<32x128xbf16>, vector<8x128xf32> -> vector<8x128xf32>
    %c0_39 = arith.constant 0 : index
    %c0_40 = arith.constant 0 : index
    %100 = vector.load %arg11[%c0_39, %c0_40] : memref<1x128xf32, #tpu.memory_space<vmem>>, vector<1x128xf32>
    %101 = vector.broadcast %100 : vector<1x128xf32> to vector<8x128xf32>
    %102 = arith.addf %99, %101 : vector<8x128xf32>
    %cst_41 = arith.constant 0.000000e+00 : f32
    %103 = vector.broadcast %cst_41 : f32 to vector<8x128xf32>
    %104 = arith.maximumf %102, %103 : vector<8x128xf32>
    %c0_42 = arith.constant 0 : index
    %c0_43 = arith.constant 0 : index
    %105 = vector.load %arg12[%c0_42, %c0_43] : memref<128x32xbf16, #tpu.memory_space<vmem>>, vector<128x32xbf16>
    %106 = arith.truncf %104 : vector<8x128xf32> to vector<8x128xbf16>
    %cst_44 = arith.constant dense<0.000000e+00> : vector<8x32xf32>
    %107 = tpu.matmul %106, %105, %cst_44 {dimension_numbers = #tpu.dot_dimension_numbers<[1], [0], [0], [1], [0, 0, 1, 1], [], []>} : vector<8x128xbf16>, vector<128x32xbf16>, vector<8x32xf32> -> vector<8x32xf32>
    %108 = arith.addf %72, %107 : vector<8x32xf32>
    %c0_45 = arith.constant 0 : index
    %c0_46 = arith.constant 0 : index
    %109 = vector.load %arg13[%c0_45, %c0_46] : memref<1x32xf32, #tpu.memory_space<vmem>>, vector<1x32xf32>
    %110 = vector.broadcast %109 : vector<1x32xf32> to vector<8x32xf32>
    %111 = arith.addf %108, %110 : vector<8x32xf32>
    %c0_47 = arith.constant 0 : index
    %c0_48 = arith.constant 0 : index
    %c0_49 = arith.constant 0 : index
    %112 = vector.load %arg14[%c0_47, %c0_48, %c0_49] : memref<1x8x32xf32, #tpu.memory_space<vmem>>, vector<1x8x32xf32>
    %113 = vector.shape_cast %112 : vector<1x8x32xf32> to vector<8x32xf32>
    %114 = vector.shape_cast %111 : vector<8x32xf32> to vector<1x8x32xf32>
    tpu.vector_store %arg14[%c0_47, %c0_48, %c0_49], %114 {strides = array<i32>} : memref<1x8x32xf32, #tpu.memory_space<vmem>>, vector<1x8x32xf32>,
    return
  }
  func.func @transform_0(%arg0: i32) -> (i32, i32, i32) {
    %c0_i32 = arith.constant 0 : i32
    %c0_i32_0 = arith.constant 0 : i32
    %c0_i32_1 = arith.constant 0 : i32
    return %arg0, %c0_i32, %c0_i32_0 : i32, i32, i32
  }
  func.func @transform_1(%arg0: i32) -> (i32, i32) {
    %c0_i32 = arith.constant 0 : i32
    %c0_i32_0 = arith.constant 0 : i32
    %c0_i32_1 = arith.constant 0 : i32
    return %c0_i32, %c0_i32_0 : i32, i32
  }
  func.func @transform_2(%arg0: i32) -> (i32, i32) {
    %c0_i32 = arith.constant 0 : i32
    %c0_i32_0 = arith.constant 0 : i32
    %c0_i32_1 = arith.constant 0 : i32
    return %c0_i32, %c0_i32_0 : i32, i32
  }
  func.func @transform_3(%arg0: i32) -> (i32, i32) {
    %c0_i32 = arith.constant 0 : i32
    %c0_i32_0 = arith.constant 0 : i32
    %c0_i32_1 = arith.constant 0 : i32
    return %c0_i32, %c0_i32_0 : i32, i32
  }
  func.func @transform_4(%arg0: i32) -> (i32, i32) {
    %c0_i32 = arith.constant 0 : i32
    %c0_i32_0 = arith.constant 0 : i32
    %c0_i32_1 = arith.constant 0 : i32
    return %c0_i32, %c0_i32_0 : i32, i32
  }
  func.func @transform_5(%arg0: i32) -> (i32, i32) {
    %c0_i32 = arith.constant 0 : i32
    %c0_i32_0 = arith.constant 0 : i32
    %c0_i32_1 = arith.constant 0 : i32
    return %c0_i32, %c0_i32_0 : i32, i32
  }
  func.func @transform_6(%arg0: i32) -> (i32, i32) {
    %c0_i32 = arith.constant 0 : i32
    %c0_i32_0 = arith.constant 0 : i32
    %c0_i32_1 = arith.constant 0 : i32
    return %c0_i32, %c0_i32_0 : i32, i32
  }
  func.func @transform_7(%arg0: i32) -> (i32, i32) {
    %c0_i32 = arith.constant 0 : i32
    %c0_i32_0 = arith.constant 0 : i32
    %c0_i32_1 = arith.constant 0 : i32
    return %c0_i32, %c0_i32_0 : i32, i32
  }
  func.func @transform_8(%arg0: i32) -> (i32, i32) {
    %c0_i32 = arith.constant 0 : i32
    %c0_i32_0 = arith.constant 0 : i32
    %c0_i32_1 = arith.constant 0 : i32
    return %c0_i32, %c0_i32_0 : i32, i32
  }
  func.func @transform_9(%arg0: i32) -> (i32, i32) {
    %c0_i32 = arith.constant 0 : i32
    %c0_i32_0 = arith.constant 0 : i32
    %c0_i32_1 = arith.constant 0 : i32
    return %c0_i32, %c0_i32_0 : i32, i32
  }
  func.func @transform_10(%arg0: i32) -> (i32, i32) {
    %c0_i32 = arith.constant 0 : i32
    %c0_i32_0 = arith.constant 0 : i32
    %c0_i32_1 = arith.constant 0 : i32
    return %c0_i32, %c0_i32_0 : i32, i32
  }
  func.func @transform_11(%arg0: i32) -> (i32, i32) {
    %c0_i32 = arith.constant 0 : i32
    %c0_i32_0 = arith.constant 0 : i32
    %c0_i32_1 = arith.constant 0 : i32
    return %c0_i32, %c0_i32_0 : i32, i32
  }
  func.func @transform_12(%arg0: i32) -> (i32, i32) {
    %c0_i32 = arith.constant 0 : i32
    %c0_i32_0 = arith.constant 0 : i32
    %c0_i32_1 = arith.constant 0 : i32
    return %c0_i32, %c0_i32_0 : i32, i32
  }
  func.func @transform_13(%arg0: i32) -> (i32, i32, i32) {
    %c0_i32 = arith.constant 0 : i32
    %c0_i32_0 = arith.constant 0 : i32
    %c0_i32_1 = arith.constant 0 : i32
    return %arg0, %c0_i32, %c0_i32_0 : i32, i32, i32
  }
}

</mosaic_0001>

<bundles_post_ra>
// kernel: tpu_custom_call.1
= control target key start
LH: loop header
LB: loop body
LE: loop exit
PB: predicated region body
PF: predicated region fallthrough
CT: control target
= control target key end

     0   :  { %s2166_s0 = inlined_call_operand.vmem [shape: f32[2,8,32], index: 0, kind: input, shape index: {}]   ;;  %s2167_s1 = inlined_call_operand.vmem [shape: f32[1,32], index: 1, kind: input, shape index: {}]   ;;  %s2168_s2 = inlined_call_operand.vmem [shape: f32[1,32], index: 2, kind: input, shape index: {}]   ;;  %s2169_s3 = inlined_call_operand.vmem [shape: bf16[32,96], index: 3, kind: input, shape index: {}]   ;;  %s2170_s4 = inlined_call_operand.vmem [shape: f32[1,96], index: 4, kind: input, shape index: {}]   ;;  %s2171_s5 = inlined_call_operand.vmem [shape: bf16[32,32], index: 5, kind: input, shape index: {}]   ;;  %s2172_s6 = inlined_call_operand.vmem [shape: f32[1,32], index: 6, kind: input, shape index: {}]   ;;  %s2173_s7 = inlined_call_operand.vmem [shape: f32[1,32], index: 7, kind: input, shape index: {}]   ;;  %s2174_s8 = inlined_call_operand.vmem [shape: f32[1,32], index: 8, kind: input, shape index: {}]   ;;  %s2175_s9 = inlined_call_operand.vmem [shape: bf16[32,128], index: 9, kind: input, shape index: {}]   ;;  %s2176_s10 = inlined_call_operand.vmem [shape: f32[1,128], index: 10, kind: input, shape index: {}]   ;;  %s2177_s11 = inlined_call_operand.vmem [shape: bf16[128,32], index: 11, kind: input, shape index: {}]   ;;  %s2178_s12 = inlined_call_operand.vmem [shape: f32[1,32], index: 12, kind: input, shape index: {}]   ;;  %s2179_s13 = inlined_call_operand.hbm [shape: f32[2,8,32], index: 13, kind: output, shape index: {}]  }
   0x1   :  { %2180 = sst [smem:[#allocation5_spill]] %s2166_s0 }
   0x2   :  { %2181 = sst [smem:[#allocation6_spill]] %s2167_s1 }
   0x3   :  { %2182 = sst [smem:[#allocation7_spill]] %s2168_s2 }
   0x4   :  { %2183 = sst [smem:[#allocation8_spill]] %s2169_s3 }
   0x5   :  { %18 = vsyncpa [#allocation3], 0 }
   0x6   :  { %20 = vsyncpa [#allocation3 + $0x1], 0  ;;  %s1827_s25 = smov 0   ;;  %s1829_s26 = smov 0  }
   0x7   :  { %s1831_s27 = smov 0   ;;  %s1833_s28 = smov 0  }
   0x8 LB: > { %s1848_s29 = sadd.s32 4294967295, %s1738_s28   ;;  %s1499_s30 = sadd.s32 4294967294, %s1738_s28   ;;  %s1738_s28 = sphi %s1833_s28, %s2193_s28   ;;  %s1734_s27 = sphi %s1831_s27, %s2192_s27   ;;  %s1730_s26 = sphi %s1829_s26, %s2191_s26   ;;  %s1726_s25 = sphi %s1827_s25, %s2190_s25  }
   0x9   : > { %s1852_s14 = sadd.s32 1, %s1738_s28   ;;  %s311_s15 = sadd.s32 1, %s1734_s27 }
   0xa   : > { %s308_s16 = ssub.s32 %s1738_s28, %s1852_s14  ;;  %p321_p0 = scmp.ne.s32.totalorder %s1734_s27, %s1730_s26 }
   0xb   : > { %p309_p1 = scmp.eq.s32.totalorder %s308_s16, 0  ;;  %p322_p2 = scmp.eq.s32.totalorder %s1848_s29, 1 }
   0xc   : > { %p327_p3 = scmp.ne.s32.totalorder %s1730_s26, %s1726_s25  ;;  %p328_p4 = scmp.eq.s32.totalorder %s1499_s30, 1 }
   0xd   : > { %s1863_s17 = scalar_select %p309_p1, %s1734_s27, %s311_s15  }
   0xe   : > { %p1865_p5 = por %p322_p2, %p321_p0  ;;  %p1869_p6 = por %p328_p4, %p327_p3 }
   0xf   : > { %p1502_p7 = scmp.ge.s32.totalorder %s1738_s28, 1  ;;  %p389_p8 = scmp.lt.s32.totalorder %s1738_s28, 3 }
  0x11   : > { %p390_p9 = pnand %p1502_p7, %p389_p8 }
  0x12   : > { %p432_p10 = scmp.lt.s32.totalorder (!%p390_p9), %s1848_s29, 1  ;;  %s2186_s0 = sld [smem:[#allocation5_spill]] (!%p390_p9) }
  0x13   : > { %393 = sbr.rel (%p390_p9) target bundleno = 1960 (0x7a8), region = 72  ;;  %s2187_s3 = sld [smem:[#allocation8_spill]] (!%p390_p9) }
  0x14   : > { %s2188_s1 = sld [smem:[#allocation6_spill]] (!%p390_p9)  ;;  %s1741_s16 = smov (!%p390_p9), 72  }
  0x15   : > { %s2189_s2 = sld [smem:[#allocation7_spill]] (!%p390_p9)  ;;  %s1744_s22 = smov (!%p390_p9), 80  }
  0x16   : > { %s1745_s23 = smov (!%p390_p9), 88   ;;  %s1747_s30 = smov (!%p390_p9), 112  }
  0x17   : > { %s1748_s15 = smov (!%p390_p9), 64  }
  0x18   : > { %s433_s20 = scalar_select %p432_p10, %s1848_s29, 1  ;;  %vm440_vm0 = vcmask 261120   ;;  %v1740_v2 = vmov 32.0   ;;  %v1648_v32 = vld [vmem:[%s2170_s4] ss:$0 sm:$0xff]  ;;  %vm584_vm5 = vcmask 1047556  }
  0x19   : > { %1654 = vrcp.f32 %v1740_v2  ;;  %v1577_v14 = vld [vmem:[%s2187_s3 + $0x8] sm:$0xff]  ;;  %v1576_v15 = vld [vmem:[%s2187_s3] sm:$0xff]  ;;  %v1749_v42 = vmov 1983009808   ;;  %v1750_v62 = vmov 1934713408  }
  0x1a   : > { %s1504_s21 = sshll.u32 %s433_s20, 3  ;;  %508 = vmatpush.bf16.msra.mxu0 %v1577_v14  ;;  %v1646_v25 = vld [vmem:[%s2188_s1] ss:$0 sm:$0xff]  ;;  %s1742_s20 = smov 120   ;;  %v587_v43 = vunpack.c.l.s4 %v1749_v42  ;;  %v601_v63 = vunpack.c.l.s4 %v1750_v62  ;;  %vm820_vm6 = vcmask 64512   ;;  %vm1019_vm8 = vcmask 1043456  }
  0x1b   : > { %s435_s24 = scalar_lea.vmem %s2186_s0, %s1504_s21  ;;  %v1647_v28 = vld [vmem:[%s2189_s2] ss:$0 sm:$0xff]  ;;  %s1743_s21 = smov 96  }
  0x1c   : > { %v1880_v0 = vld [vmem:[%s435_s24] sm:$0xff]  ;;  %s1746_s24 = smov 104   ;;  %v1918_v54 = vunpack.c.0.s8 %v587_v43 }
  0x1d   : > { %v441_v1 = vsel %vm440_vm0, %v1880_v0, 0.0 }
  0x1e   : > { %442 = vadd.xlane.f32.xlu0 %v441_v1  ;;  %509 = vmatpush.bf16.msra.mxu0 %v1576_v15 }
  0x1f   : > { %v1655_v3 = vpop.eup %1654 }
  0x20   : > { %v445_v4 = vmul.f32 32.0, %v1655_v3  ;;  %vm449_vm1 = vweird.f32 %v1655_v3 }
  0x22   : > { %v446_v5 = vsub.f32 1.0, %v445_v4 }
  0x24   : > { %v447_v6 = vmul.f32 %v1655_v3, %v446_v5 }
  0x26   : > { %v448_v7 = vadd.f32 %v1655_v3, %v447_v6 }
  0x28   : > { %v1884_v8 = vsel %vm449_vm1, %v1655_v3, %v448_v7 }
  0x91   : > { %v443_v9 = vpop.xlane.xlu0 %442 }
  0x92   : > { %v451_v10 = vmul.f32 %v1884_v8, %v443_v9 }
  0x94   : > { %v452_v11 = vsub.f32 %v1880_v0, %v451_v10  ;;  %v1924_v10 = vunpack.c.0.s8 %v601_v63 }
  0x96   : > { %v453_v12 = vmul.f32 %v452_v11, %v452_v11 }
  0x98   : > { %v454_v13 = vsel %vm440_vm0, %v453_v12, 0.0 }
  0x99   : > { %455 = vadd.xlane.f32.xlu0 %v454_v13 }
 0x10c   : > { %v456_v16 = vpop.xlane.xlu0 %455 }
 0x10d   : > { %v457_v17 = vmul.f32 %v456_v16, %v1884_v8 }
 0x10f   : > { %v458_v18 = vadd.f32 1e-05, %v457_v17 }
 0x111   : > { %1656 = vrsqrt.f32 %v458_v18  ;;  %vm465_vm3 = vweird.f32 %v458_v18 }
 0x117   : > { %v1657_v19 = vpop.eup %1656 }
 0x118   : > { %v460_v20 = vmul.f32 %v1657_v19, %v458_v18  ;;  %vm466_vm2 = vweird.f32 %v1657_v19 }
 0x119   : > { %vm467_vm4 = vmor %vm465_vm3, %vm466_vm2 }
 0x11a   : > { %v461_v21 = vmul.f32 %v1657_v19, %v460_v20 }
 0x11c   : > { %v462_v22 = vmul.f32 0.5, %v461_v21 }
 0x11e   : > { %v463_v23 = vsub.f32 1.5, %v462_v22 }
 0x120   : > { %v464_v24 = vmul.f32 %v1657_v19, %v463_v23 }
 0x122   : > { %v468_v26 = vsel %vm467_vm4, %v1657_v19, %v464_v24 }
 0x123   : > { %v469_v27 = vmul.f32 %v468_v26, %v452_v11 }
 0x125   : > { %v473_v29 = vmul.f32 %v1646_v25, %v469_v27 }
 0x127   : > { %v477_v30 = vadd.f32 %v1647_v28, %v473_v29 }
 0x129   : > { %v482_v31 = vpack.c.bf16 %v477_v30, %v477_v30 }
 0x12b   : > { %1513 = vmatmul.msk.bf16.vlgmr.msra.gmra.mxu0 %vm440_vm0, %v482_v31 }
 0x1a8   : > { %v511_v33 = vpop.f32.mrf.mxu0 }
 0x1a9   : > { %v512_v34 = vadd.f32 %v1648_v32, %v511_v33 }
 0x1ab   : > { %v1906_v35 = vpack.c.bf16 %v512_v34, %v512_v34 }
 0x1ad   : > { %529 = vrot.lane.b32.xlu0 %v1906_v35, %s1741_s16  ;;  %517 = vrot.lane.b32.xlu2 %v1906_v35, %s1742_s20  ;;  %v543_v48 = vshrl.u32 %v1906_v35, 16  ;;  %s1751_s16 = smov 48   ;;  %s1752_s20 = smov 40  }
 0x1ae   : > { %523 = vrot.lane.b32.xlu1 %v1906_v35, %s1743_s21  ;;  %s1753_s21 = smov 56  }
 0x1b0   : > { %v513_v36 = vpop.f32.mrf.mxu0 }
 0x1b5   : > { %527 = vrot.lane.b32.xlu2 %v1906_v35, %s1744_s22  ;;  %s1754_s22 = smov 8  }
 0x1b6   : > { %525 = vrot.lane.b32.xlu1 %v1906_v35, %s1745_s23  ;;  %s1755_s23 = smov 16  }
 0x1bd   : > { %521 = vrot.lane.b32.xlu2 %v1906_v35, %s1746_s24  ;;  %s1756_s24 = smov 24  }
 0x1be   : > { %519 = vrot.lane.b32.xlu1 %v1906_v35, %s1747_s30  ;;  %s429_s30 = sand.u32 1, %s1730_s26  }
 0x1c6   : > { %531 = vrot.lane.b32.xlu1 %v1906_v35, %s1748_s15  ;;  %s1503_s15 = sshll.u32 %s429_s30, 3 }
 0x207   : > { %v518_v37 = vpop.permute.xlu2 %517 }
 0x208   : > { %v544_v40 = vshrl.u32 %v518_v37, 16  ;;  %v541_v49 = vpack.i.b16 %v518_v37, %v1906_v35 }
 0x20a   : > { %v545_v53 = vpack.i.b16 %v544_v40, %v543_v48 }
 0x20f   : > { %v528_v39 = vpop.permute.xlu2 %527 }
 0x210   : > { %v567_v55 = vshrl.u32 %v528_v39, 16 }
 0x217   : > { %v522_v59 = vpop.permute.xlu2 %521 }
 0x218   : > { %v552_v3 = vshrl.u32 %v522_v59, 16 }
 0x21f   : > { %v530_v41 = vpop.permute.xlu0 %529 }
 0x220   : > { %v524_v38 = vpop.permute.xlu1 %523  ;;  %v568_v50 = vshrl.u32 %v530_v41, 16  ;;  %v565_v56 = vpack.i.b16 %v530_v41, %v528_v39 }
 0x221   : > { %v559_v45 = vshrl.u32 %v524_v38, 16 }
 0x222   : > { %v569_v60 = vpack.i.b16 %v568_v50, %v567_v55  ;;  %v590_v4 = vrot.slane %v565_v56, 4 }
 0x224   : > { %v618_v9 = vrot.slane %v569_v60, 4 }
 0x228   : > { %v526_v44 = vpop.permute.xlu1 %525 }
 0x229   : > { %v557_v46 = vpack.i.b16 %v526_v44, %v524_v38  ;;  %v560_v47 = vshrl.u32 %v526_v44, 16 }
 0x22b   : > { %v561_v51 = vpack.i.b16 %v560_v47, %v559_v45  ;;  %v583_v52 = vrot.slane %v557_v46, 4 }
 0x22d   : > { %v585_v57 = vsel %vm584_vm5, %v583_v52, %v541_v49  ;;  %v612_v58 = vrot.slane %v561_v51, 4 }
 0x22e   : > { %v589_v1 = vperm.slane %v585_v57, %v1918_v54 }
 0x22f   : > { %v613_v61 = vsel %vm584_vm5, %v612_v58, %v545_v53 }
 0x230   : > { %v520_v2 = vpop.permute.xlu1 %519  ;;  %v617_v7 = vperm.slane %v613_v61, %v1918_v54  ;;  %v598_v13 = vrot.slane %v589_v1, 4 }
 0x231   : > { %v549_v5 = vpack.i.b16 %v522_v59, %v520_v2  ;;  %v551_v6 = vshrl.u32 %v520_v2, 16 }
 0x232   : > { %v626_v16 = vrot.slane %v617_v7, 4 }
 0x233   : > { %v553_v11 = vpack.i.b16 %v552_v3, %v551_v6  ;;  %v591_v12 = vsel %vm584_vm5, %v590_v4, %v549_v5 }
 0x234   : > { %v595_v14 = vperm.slane %v591_v12, %v1918_v54 }
 0x235   : > { %v619_v15 = vsel %vm584_vm5, %v618_v9, %v553_v11 }
 0x236   : > { %v596_v17 = vrot.slane %v595_v14, 4  ;;  %v599_v18 = vsel %vm584_vm5, %v595_v14, %v598_v13  ;;  %v623_v19 = vperm.slane %v619_v15, %v1918_v54 }
 0x237   : > { %v607_v20 = vperm.slane %v599_v18, %v1924_v10 }
 0x238   : > { %v597_v21 = vsel %vm584_vm5, %v596_v17, %v589_v1  ;;  %v624_v22 = vrot.slane %v623_v19, 4  ;;  %v627_v23 = vsel %vm584_vm5, %v623_v19, %v626_v16 }
 0x239   : > { %v603_v24 = vperm.slane %v597_v21, %v1924_v10  ;;  %v610_v25 = vrot.slane %v607_v20, 4  ;;  %v635_v26 = vperm.slane %v627_v23, %v1924_v10 }
 0x23a   : > { %v625_v27 = vsel %vm584_vm5, %v624_v22, %v617_v7 }
 0x23b   : > { %v608_v28 = vrot.slane %v603_v24, 4  ;;  %v611_v29 = vsel %vm584_vm5, 0, %v610_v25  ;;  %v631_v30 = vperm.slane %v625_v27, %v1924_v10  ;;  %v638_v31 = vrot.slane %v635_v26, 4 }
 0x23c   : > { %v697_v32 = vrot.slane %v611_v29, 4  ;;  %v692_v33 = vsel %vm584_vm5, %v610_v25, %v603_v24  ;;  %v901_v27 = vlaneseq }
 0x23d   : > { %v639_v34 = vsel %vm584_vm5, 0, %v638_v31  ;;  %v609_v36 = vsel %vm584_vm5, 0, %v608_v28  ;;  %v636_v37 = vrot.slane %v631_v30, 4  ;;  %v696_v38 = vperm.slane %v692_v33, %v1918_v54 }
 0x23e   : > { %v698_v39 = vsel %vm584_vm5, %v697_v32, %v609_v36  ;;  %v719_v40 = vsel %vm584_vm5, %v638_v31, %v631_v30  ;;  %v724_v41 = vrot.slane %v639_v34, 4  ;;  %v902_v28 = vshrl.u32 %v901_v27, 7 }
 0x23f   : > { %v637_v42 = vsel %vm584_vm5, 0, %v636_v37  ;;  %v702_v43 = vperm.slane %v698_v39, %v1918_v54  ;;  %v705_v44 = vrot.slane %v696_v38, 4  ;;  %v723_v45 = vperm.slane %v719_v40, %v1918_v54 }
 0x240   : > { %v725_v46 = vsel %vm584_vm5, %v724_v41, %v637_v42  ;;  %v904_v29 = vand.u32 127, %v901_v27 }
 0x241   : > { %v703_v47 = vrot.slane %v702_v43, 4  ;;  %v706_v48 = vsel %vm584_vm5, %v702_v43, %v705_v44  ;;  %v729_v49 = vperm.slane %v725_v46, %v1918_v54  ;;  %v732_v50 = vrot.slane %v723_v45, 4 }
 0x242   : > { %v714_v51 = vperm.slane %v706_v48, %v1924_v10  ;;  %vm905_vm7 = vcmp.ge.s32.totalorder %v902_v28, %v904_v29 }
 0x243   : > { %v730_v52 = vrot.slane %v729_v49, 4  ;;  %v733_v53 = vsel %vm584_vm5, %v729_v49, %v732_v50  ;;  %v704_v55 = vsel %vm584_vm5, %v703_v47, %v696_v38 }
 0x244   : > { %v741_v56 = vperm.slane %v733_v53, %v1924_v10  ;;  %v717_v57 = vrot.slane %v714_v51, 4  ;;  %v799_v58 = vshrl.u32 %v714_v51, 16  ;;  %v710_v59 = vperm.slane %v704_v55, %v1924_v10 }
 0x245   : > { %v731_v60 = vsel %vm584_vm5, %v730_v52, %v723_v45 }
 0x246   : > { %v798_v61 = vpack.i.b16 %v741_v56, %v714_v51  ;;  %v800_v62 = vshrl.u32 %v741_v56, 16  ;;  %v718_v63 = vsel %vm584_vm5, 0, %v717_v57  ;;  %v744_v1 = vrot.slane %v741_v56, 4  ;;  %v532_v51 = vpop.permute.xlu1 %531 }
 0x247   : > { %v737_v2 = vperm.slane %v731_v60, %v1924_v10  ;;  %v805_v7 = vshrl.u32 %v718_v63, 16  ;;  %v715_v12 = vrot.slane %v710_v59, 4  ;;  %v787_v20 = vshrl.u32 %v710_v59, 16 }
 0x248   : > { %v825_v3 = vsel %vm820_vm6, %v798_v61, 0  ;;  %v801_v4 = vpack.i.b16 %v800_v62, %v799_v58  ;;  %v745_v5 = vsel %vm584_vm5, 0, %v744_v1 }
 0x249   : > { %834 = vmatpush.bf16.xpose.msra.mxu1 %v825_v3  ;;  %v804_v6 = vpack.i.b16 %v745_v5, %v718_v63  ;;  %v806_v9 = vshrl.u32 %v745_v5, 16  ;;  %v742_v13 = vrot.slane %v737_v2, 4  ;;  %v788_v16 = vshrl.u32 %v737_v2, 16 }
 0x24a   : > { %v844_v11 = vsel %vm820_vm6, %v801_v4, 0  ;;  %v786_v19 = vpack.i.b16 %v737_v2, %v710_v59  ;;  %v716_v21 = vsel %vm584_vm5, 0, %v715_v12  ;;  %v574_v12 = vshrl.u32 %v532_v51, 16 }
 0x24b   : > { %853 = vmatpush.bf16.xpose.msra.mxu2 %v844_v11  ;;  %v863_v14 = vsel %vm820_vm6, %v804_v6, 0  ;;  %v807_v15 = vpack.i.b16 %v806_v9, %v805_v7  ;;  %v743_v17 = vsel %vm584_vm5, 0, %v742_v13  ;;  %v789_v23 = vpack.i.b16 %v788_v16, %v787_v20 }
 0x24c   : > { %872 = vmatpush.bf16.xpose.msra.mxu3 %v863_v14  ;;  %v794_v22 = vshrl.u32 %v743_v17, 16  ;;  %v792_v24 = vpack.i.b16 %v743_v17, %v716_v21  ;;  %v793_v25 = vshrl.u32 %v716_v21, 16 }
 0x24d   : > { %v882_v18 = vsel %vm820_vm6, %v807_v15, 0 }
 0x24e   : > { %891 = vmatpush.bf16.xpose.msrb.mxu0 %v882_v18  ;;  %v795_v26 = vpack.i.b16 %v794_v22, %v793_v25 }
 0x250   : > { %1514 = vmatmul.msk.bf16.vlgmr.msra.gmra.mxu1 %vm820_vm6, %v786_v19 }
 0x252   : > { %1515 = vmatmul.msk.bf16.vlgmr.msra.gmra.mxu2 %vm820_vm6, %v789_v23 }
 0x253   : > { %1516 = vmatmul.msk.bf16.vlgmr.msra.gmra.mxu3 %vm820_vm6, %v792_v24 }
 0x255   : > { %1517 = vmatmul.msk.bf16.vlgmr.msrb.gmra.mxu0 %vm820_vm6, %v795_v26 }
 0x2cd   : > { %v836_v30 = vpop.f32.mrf.mxu1 }
 0x2ce   : > { %v897_v31 = vmul.f32 0.35355338, %v836_v30 }
 0x2d0   : > { %v908_v32 = vsel %vm905_vm7, %v897_v31, -1e+30 }
 0x2d1   : > { %v912_v33 = vsel %vm820_vm6, %v908_v32, -inf }
 0x2d2   : > { %913 = vmax.xlane.f32.xlu0 %v912_v33  ;;  %v893_v34 = vpop.f32.mrf.mxu0 }
 0x2d3   : > { %v900_v36 = vmul.f32 0.35355338, %v893_v34 }
 0x2d5   : > { %v838_v37 = vpop.f32.mrf.mxu1  ;;  %v855_v38 = vpop.f32.mrf.mxu2  ;;  %v911_v39 = vsel %vm905_vm7, %v900_v36, -1e+30 }
 0x2d6   : > { %v898_v40 = vmul.f32 0.35355338, %v855_v38  ;;  %v874_v41 = vpop.f32.mrf.mxu3  ;;  %v921_v42 = vsel %vm820_vm6, %v911_v39, -inf }
 0x2d7   : > { %v899_v43 = vmul.f32 0.35355338, %v874_v41  ;;  %922 = vmax.xlane.f32.xlu2 %v921_v42 }
 0x2d8   : > { %v909_v44 = vsel %vm905_vm7, %v898_v40, -1e+30 }
 0x2d9   : > { %v915_v45 = vsel %vm820_vm6, %v909_v44, -inf  ;;  %v910_v47 = vsel %vm905_vm7, %v899_v43, -1e+30 }
 0x2da   : > { %916 = vmax.xlane.f32.xlu1 %v915_v45  ;;  %v895_v46 = vpop.f32.mrf.mxu0  ;;  %v918_v50 = vsel %vm820_vm6, %v910_v47, -inf }
 0x2dd   : > { %v857_v48 = vpop.f32.mrf.mxu2 }
 0x2de   : > { %v876_v49 = vpop.f32.mrf.mxu3 }
 0x2df   : > { %919 = vmax.xlane.f32.xlu2 %v918_v50 }
 0x2e6   : > { %535 = vrot.lane.b32.xlu0 %v1906_v35, %s1751_s16  ;;  %s1573_s16 = sshll.u32 %s1848_s29, 3  ;;  %s1425_s29 = scalar_lea.sflag [#allocation3], %s429_s30 }
 0x2e7   : > { %s1435_s1 = scalar_lea.hbm %s2179_s13, %s1573_s16 }
 0x2e8   : > { %s1439_s2 = sshll.u32 %s1435_s1, 4  ;;  %s1440_s2 = int_to_ptr.hbm [resolvable:$true] %s1439_s2 }
 0x2e9   : > { %s1690_s3 = sshra.s32 %s1440_s2, 4  ;;  %s1691_s3 = int_to_ptr.hbm [resolvable:$true] %s1690_s3 }
 0x2ea   : > { %s1692_s0 = scalar_lea.hbm %s1691_s3, 8  ;;  %p1697_p0 = scmp.lt.s32.totalorder %s1691_s3, %s2179_s13 }
 0x2eb   : > { %p1693_p11 = scmp.ne.s32.totalorder %s1691_s3, %s1692_s0 }
 0x2ed   : > { %p1694_p12 = pnand %p1693_p11, %p1865_p5 }
 0x2ef   : > { %p1695_p13 = pneg %p1694_p12 }
 0x2f3   : > { %537 = vrot.lane.b32.xlu1 %v1906_v35, %s1752_s20 }
 0x2f7   : > { %533 = vrot.lane.b32.xlu2 %v1906_v35, %s1753_s21 }
 0x345   : > { %v914_v52 = vpop.xlane.xlu0 %913 }
 0x346   : > { %v924_v53 = vsub.f32 %v908_v32, %v914_v52 }
 0x348   : > { %v928_v55 = vmul.f32 1.442695, %v924_v53 }
 0x34a   : > { %1658 = vpow2.f32 %v928_v55  ;;  %v923_v56 = vpop.xlane.xlu2 %922 }
 0x34b   : > { %v927_v60 = vsub.f32 %v911_v39, %v923_v56 }
 0x34d   : > { %v917_v57 = vpop.xlane.xlu1 %916  ;;  %v934_v35 = vmul.f32 1.442695, %v927_v60 }
 0x34e   : > { %v925_v58 = vsub.f32 %v909_v44, %v917_v57 }
 0x350   : > { %v1981_v59 = vpop.eup %1658  ;;  %v930_v61 = vmul.f32 1.442695, %v925_v58 }
 0x351   : > { %v936_v62 = vsel %vm820_vm6, %v1981_v59, 0.0 }
 0x352   : > { %1660 = vpow2.f32 %v930_v61  ;;  %937 = vadd.xlane.f32.xlu1 %v936_v62  ;;  %v920_v63 = vpop.xlane.xlu2 %919 }
 0x353   : > { %v926_v1 = vsub.f32 %v910_v47, %v920_v63 }
 0x355   : > { %v932_v2 = vmul.f32 1.442695, %v926_v1 }
 0x357   : > { %1662 = vpow2.f32 %v932_v2 }
 0x358   : > { %v1985_v3 = vpop.eup %1660  ;;  %1664 = vpow2.f32 %v934_v35  ;;  %v536_v16 = vpop.permute.xlu0 %535 }
 0x359   : > { %v939_v4 = vsel %vm820_vm6, %v1985_v3, 0.0  ;;  %v580_v19 = vshrl.u32 %v536_v16, 16 }
 0x35a   : > { %940 = vadd.xlane.f32.xlu2 %v939_v4  ;;  %v534_v5 = vpop.permute.xlu2 %533 }
 0x35b   : > { %v575_v9 = vshrl.u32 %v534_v5, 16  ;;  %v573_v13 = vpack.i.b16 %v534_v5, %v532_v51 }
 0x35d   : > { %v1989_v6 = vpop.eup %1662  ;;  %v576_v15 = vpack.i.b16 %v575_v9, %v574_v12  ;;  %v644_v17 = vperm.slane %v573_v13, %v1918_v54 }
 0x35e   : > { %v1991_v7 = vpop.eup %1664  ;;  %v942_v11 = vsel %vm820_vm6, %v1989_v6, 0.0 }
 0x35f   : > { %943 = vadd.xlane.f32.xlu0 %v942_v11  ;;  %v945_v14 = vsel %vm820_vm6, %v1991_v7, 0.0  ;;  %v670_v20 = vperm.slane %v576_v15, %v1918_v54  ;;  %v652_v23 = vrot.slane %v644_v17, 4 }
 0x361   : > { %v678_v26 = vrot.slane %v670_v20, 4 }
 0x362   : > { %946 = vadd.xlane.f32.xlu2 %v945_v14 }
 0x365   : > { %v538_v18 = vpop.permute.xlu1 %537 }
 0x366   : > { %v579_v21 = vpack.i.b16 %v538_v18, %v536_v16  ;;  %v581_v22 = vshrl.u32 %v538_v18, 16 }
 0x368   : > { %v582_v24 = vpack.i.b16 %v581_v22, %v580_v19  ;;  %v649_v25 = vperm.slane %v579_v21, %v1918_v54 }
 0x36a   : > { %v650_v27 = vrot.slane %v649_v25, 4  ;;  %v653_v28 = vsel %vm584_vm5, %v649_v25, %v652_v23  ;;  %v675_v29 = vperm.slane %v582_v24, %v1918_v54 }
 0x36b   : > { %v661_v30 = vperm.slane %v653_v28, %v1924_v10 }
 0x36c   : > { %v651_v31 = vsel %vm584_vm5, %v650_v27, %v644_v17  ;;  %v676_v32 = vrot.slane %v675_v29, 4  ;;  %v679_v33 = vsel %vm584_vm5, %v675_v29, %v678_v26 }
 0x36d   : > { %v657_v34 = vperm.slane %v651_v31, %v1924_v10  ;;  %v664_v36 = vrot.slane %v661_v30, 4  ;;  %v687_v37 = vperm.slane %v679_v33, %v1924_v10 }
 0x36e   : > { %v677_v38 = vsel %vm584_vm5, %v676_v32, %v670_v20 }
 0x36f   : > { %v662_v39 = vrot.slane %v657_v34, 4  ;;  %v665_v40 = vsel %vm584_vm5, 0, %v664_v36  ;;  %v683_v41 = vperm.slane %v677_v38, %v1924_v10  ;;  %v690_v42 = vrot.slane %v687_v37, 4 }
 0x370   : > { %v751_v43 = vrot.slane %v665_v40, 4  ;;  %v746_v48 = vsel %vm584_vm5, %v664_v36, %v657_v34 }
 0x371   : > { %v663_v44 = vsel %vm584_vm5, 0, %v662_v39  ;;  %v688_v45 = vrot.slane %v683_v41, 4  ;;  %v691_v46 = vsel %vm584_vm5, 0, %v690_v42  ;;  %v765_v52 = vsel %vm584_vm5, %v690_v42, %v683_v41 }
 0x372   : > { %v770_v47 = vrot.slane %v691_v46, 4  ;;  %v752_v49 = vsel %vm584_vm5, %v751_v43, %v663_v44  ;;  %v750_v55 = vperm.slane %v746_v48, %v1918_v54  ;;  %v769_v60 = vperm.slane %v765_v52, %v1918_v54 }
 0x373   : > { %v689_v50 = vsel %vm584_vm5, 0, %v688_v45  ;;  %v756_v51 = vperm.slane %v752_v49, %v1918_v54 }
 0x374   : > { %v771_v53 = vsel %vm584_vm5, %v770_v47, %v689_v50 }
 0x375   : > { %v757_v56 = vrot.slane %v756_v51, 4  ;;  %v775_v57 = vperm.slane %v771_v53, %v1918_v54 }
 0x377   : > { %v758_v58 = vsel %vm584_vm5, %v757_v56, %v750_v55  ;;  %v776_v61 = vrot.slane %v775_v57, 4 }
 0x378   : > { %v762_v62 = vperm.slane %v758_v58, %v1924_v10 }
 0x379   : > { %v777_v63 = vsel %vm584_vm5, %v776_v61, %v769_v60 }
 0x37a   : > { %v781_v1 = vperm.slane %v777_v63, %v1924_v10  ;;  %v763_v35 = vrot.slane %v762_v62, 4  ;;  %v811_v2 = vshrl.u32 %v762_v62, 16 }
 0x37c   : > { %v810_v4 = vpack.i.b16 %v781_v1, %v762_v62  ;;  %v812_v5 = vshrl.u32 %v781_v1, 16  ;;  %v764_v9 = vsel %vm584_vm5, 0, %v763_v35  ;;  %v782_v11 = vrot.slane %v781_v1, 4 }
 0x37d   : > { %v817_v16 = vshrl.u32 %v764_v9, 16 }
 0x37e   : > { %v1021_v12 = vsel %vm1019_vm8, %v810_v4, 0  ;;  %v813_v13 = vpack.i.b16 %v812_v5, %v811_v2  ;;  %v783_v14 = vsel %vm584_vm5, 0, %v782_v11 }
 0x37f   : > { %1030 = vmatpush.bf16.msrb.mxu1 %v1021_v12  ;;  %v816_v15 = vpack.i.b16 %v783_v14, %v764_v9  ;;  %v818_v17 = vshrl.u32 %v783_v14, 16 }
 0x380   : > { %v1040_v18 = vsel %vm1019_vm8, %v813_v13, 0 }
 0x381   : > { %1049 = vmatpush.bf16.msrb.mxu2 %v1040_v18  ;;  %v1059_v19 = vsel %vm1019_vm8, %v816_v15, 0  ;;  %v819_v20 = vpack.i.b16 %v818_v17, %v817_v16 }
 0x382   : > { %1068 = vmatpush.bf16.msrb.mxu3 %v1059_v19 }
 0x383   : > { %v1078_v21 = vsel %vm1019_vm8, %v819_v20, 0 }
 0x384   : > { %1087 = vmatpush.bf16.msra.mxu0 %v1078_v21 }
 0x3c5   : > { %v938_v22 = vpop.xlane.xlu1 %937 }
 0x3c6   : > { %1666 = vrcp.f32 %v938_v22  ;;  %v959_v28 = vand.u32 2147483648, %v938_v22  ;;  %v957_v29 = vand.u32 2147483647, %v938_v22  ;;  %vm953_vm10 = vweird.f32 %v938_v22 }
 0x3c8   : > { %v960_v33 = vor.u32 1.1754944e-38, %v959_v28  ;;  %vm958_vm12 = vcmp.eq.f32.partialorder %v957_v29, 8.507059e+37 }
 0x3cc   : > { %v1667_v23 = vpop.eup %1666 }
 0x3cd   : > { %v949_v24 = vmul.f32 %v1667_v23, %v938_v22  ;;  %v941_v25 = vpop.xlane.xlu2 %940  ;;  %vm954_vm9 = vweird.f32 %v1667_v23 }
 0x3ce   : > { %1668 = vrcp.f32 %v941_v25  ;;  %vm955_vm11 = vmor %vm953_vm10, %vm954_vm9  ;;  %v974_v40 = vand.u32 2147483648, %v941_v25  ;;  %v972_v44 = vand.u32 2147483647, %v941_v25  ;;  %vm968_vm14 = vweird.f32 %v941_v25 }
 0x3cf   : > { %v950_v26 = vsub.f32 1.0, %v949_v24 }
 0x3d0   : > { %v975_v49 = vor.u32 1.1754944e-38, %v974_v40  ;;  %vm973_vm1 = vcmp.eq.f32.partialorder %v972_v44, 8.507059e+37 }
 0x3d1   : > { %v951_v27 = vmul.f32 %v1667_v23, %v950_v26 }
 0x3d2   : > { %v944_v30 = vpop.xlane.xlu0 %943 }
 0x3d3   : > { %v952_v31 = vadd.f32 %v1667_v23, %v951_v27  ;;  %1670 = vrcp.f32 %v944_v30  ;;  %v989_v51 = vand.u32 2147483648, %v944_v30  ;;  %vm983_vm3 = vweird.f32 %v944_v30 }
 0x3d4   : > { %v1669_v32 = vpop.eup %1668 }
 0x3d5   : > { %v964_v34 = vmul.f32 %v1669_v32, %v941_v25  ;;  %v947_v36 = vpop.xlane.xlu2 %946  ;;  %v956_v37 = vsel %vm955_vm11, %v1667_v23, %v952_v31  ;;  %vm969_vm13 = vweird.f32 %v1669_v32  ;;  %v990_v61 = vor.u32 1.1754944e-38, %v989_v51 }
 0x3d6   : > { %1672 = vrcp.f32 %v947_v36  ;;  %v961_v39 = vsel %vm958_vm12, %v960_v33, %v956_v37  ;;  %vm970_vm15 = vmor %vm968_vm14, %vm969_vm13  ;;  %v1004_v62 = vand.u32 2147483648, %v947_v36  ;;  %v1002_v1 = vand.u32 2147483647, %v947_v36 }
 0x3d7   : > { %v965_v38 = vsub.f32 1.0, %v964_v34  ;;  %v1008_v41 = vmul.f32 %v1981_v59, %v961_v39  ;;  %v987_v59 = vand.u32 2147483647, %v944_v30  ;;  %vm998_vm9 = vweird.f32 %v947_v36 }
 0x3d8   : > { %v1005_v9 = vor.u32 1.1754944e-38, %v1004_v62  ;;  %vm1003_vm11 = vcmp.eq.f32.partialorder %v1002_v1, 8.507059e+37  ;;  %vm1229_vm12 = vcmask 195584  }
 0x3d9   : > { %v1671_v42 = vpop.eup %1670  ;;  %v966_v43 = vmul.f32 %v1669_v32, %v965_v38  ;;  %v1012_v46 = vpack.c.bf16 %v1008_v41, %v1008_v41  ;;  %vm988_vm8 = vcmp.eq.f32.partialorder %v987_v59, 8.507059e+37 }
 0x3da   : > { %v979_v45 = vmul.f32 %v1671_v42, %v944_v30  ;;  %vm984_vm2 = vweird.f32 %v1671_v42 }
 0x3db   : > { %v967_v47 = vadd.f32 %v1669_v32, %v966_v43  ;;  %1518 = vmatmul.msk.bf16.vlgmr.msrb.gmra.mxu1 %vm820_vm6, %v1012_v46  ;;  %vm985_vm4 = vmor %vm983_vm3, %vm984_vm2 }
 0x3dc   : > { %v1673_v48 = vpop.eup %1672  ;;  %v980_v50 = vsub.f32 1.0, %v979_v45 }
 0x3dd   : > { %v994_v52 = vmul.f32 %v1673_v48, %v947_v36  ;;  %v971_v53 = vsel %vm970_vm15, %v1669_v32, %v967_v47  ;;  %vm999_vm7 = vweird.f32 %v1673_v48 }
 0x3de   : > { %v981_v55 = vmul.f32 %v1671_v42, %v980_v50  ;;  %v976_v56 = vsel %vm973_vm1, %v975_v49, %v971_v53  ;;  %vm1000_vm10 = vmor %vm998_vm9, %vm999_vm7 }
 0x3df   : > { %v995_v57 = vsub.f32 1.0, %v994_v52  ;;  %v1009_v58 = vmul.f32 %v1985_v3, %v976_v56 }
 0x3e0   : > { %v982_v60 = vadd.f32 %v1671_v42, %v981_v55 }
 0x3e1   : > { %v996_v63 = vmul.f32 %v1673_v48, %v995_v57  ;;  %v1013_v35 = vpack.c.bf16 %v1009_v58, %v1009_v58 }
 0x3e2   : > { %v986_v2 = vsel %vm985_vm4, %v1671_v42, %v982_v60 }
 0x3e3   : > { %v997_v4 = vadd.f32 %v1673_v48, %v996_v63  ;;  %1519 = vmatmul.msk.bf16.vlgmr.msrb.gmra.mxu2 %vm820_vm6, %v1013_v35  ;;  %v991_v5 = vsel %vm988_vm8, %v990_v61, %v986_v2 }
 0x3e4   : > { %v1010_v3 = vmul.f32 %v1989_v6, %v991_v5 }
 0x3e5   : > { %v1001_v11 = vsel %vm1000_vm10, %v1673_v48, %v997_v4 }
 0x3e6   : > { %v1006_v12 = vsel %vm1003_vm11, %v1005_v9, %v1001_v11  ;;  %v1014_v13 = vpack.c.bf16 %v1010_v3, %v1010_v3 }
 0x3e7   : > { %v1011_v14 = vmul.f32 %v1991_v7, %v1006_v12 }
 0x3e8   : > { %1520 = vmatmul.msk.bf16.vlgmr.msrb.gmra.mxu3 %vm820_vm6, %v1014_v13 }
 0x3e9   : > { %v1015_v15 = vpack.c.bf16 %v1011_v14, %v1011_v14 }
 0x3eb   : > { %1521 = vmatmul.msk.bf16.vlgmr.msra.gmra.mxu0 %vm820_vm6, %v1015_v15 }
 0x458   : > { %v1032_v16 = vpop.f32.mrf.mxu1 }
 0x459   : > { %v1093_v18 = vpack.c.bf16 %v1032_v16, %v1032_v16 }
 0x45b   : > { %v1100_v22 = vshrl.u32 %v1093_v18, 16 }
 0x460   : > { %v1034_v17 = vpop.f32.mrf.mxu1 }
 0x466   : > { %v1051_v19 = vpop.f32.mrf.mxu2 }
 0x467   : > { %v1094_v20 = vpack.c.bf16 %v1051_v19, %v1051_v19 }
 0x468   : > { %v1089_v21 = vpop.f32.mrf.mxu0 }
 0x469   : > { %v1099_v23 = vpack.i.b16 %v1094_v20, %v1093_v18  ;;  %v1101_v6 = vshrl.u32 %v1094_v20, 16  ;;  %v1096_v24 = vpack.c.bf16 %v1089_v21, %v1089_v21 }
 0x46b   : > { %v1102_v25 = vpack.i.b16 %v1101_v6, %v1100_v22  ;;  %v1070_v26 = vpop.f32.mrf.mxu3  ;;  %v1113_v27 = vperm.slane %v1099_v23, %v1918_v54  ;;  %v1107_v29 = vshrl.u32 %v1096_v24, 16 }
 0x46c   : > { %v1095_v7 = vpack.c.bf16 %v1070_v26, %v1070_v26 }
 0x46d   : > { %v1139_v28 = vperm.slane %v1102_v25, %v1918_v54  ;;  %v1121_v33 = vrot.slane %v1113_v27, 4 }
 0x46e   : > { %v1105_v30 = vpack.i.b16 %v1096_v24, %v1095_v7  ;;  %v1106_v31 = vshrl.u32 %v1095_v7, 16  ;;  %v1053_v32 = vpop.f32.mrf.mxu2 }
 0x46f   : > { %v1147_v38 = vrot.slane %v1139_v28, 4 }
 0x470   : > { %v1108_v34 = vpack.i.b16 %v1107_v29, %v1106_v31  ;;  %v1118_v36 = vperm.slane %v1105_v30, %v1918_v54  ;;  %v1091_v37 = vpop.f32.mrf.mxu0  ;;  %v1579_v30 = vld [vmem:[%s2171_s5 + $0x8] sm:$0xff]  ;;  %v1578_v31 = vld [vmem:[%s2171_s5] sm:$0xff] }
 0x471   : > { %1256 = vmatpush.bf16.msra.mxu1 %v1579_v30 }
 0x472   : > { %v1119_v39 = vrot.slane %v1118_v36, 4  ;;  %v1122_v40 = vsel %vm584_vm5, %v1118_v36, %v1121_v33  ;;  %v1144_v41 = vperm.slane %v1108_v34, %v1918_v54 }
 0x473   : > { %v1130_v42 = vperm.slane %v1122_v40, %v1924_v10  ;;  %v1072_v43 = vpop.f32.mrf.mxu3 }
 0x474   : > { %v1120_v44 = vsel %vm584_vm5, %v1119_v39, %v1113_v27  ;;  %v1145_v45 = vrot.slane %v1144_v41, 4  ;;  %v1148_v46 = vsel %vm584_vm5, %v1144_v41, %v1147_v38  ;;  %v1649_v39 = vld [vmem:[%s2172_s6] ss:$0 sm:$0xff] }
 0x475   : > { %v1126_v47 = vperm.slane %v1120_v44, %v1924_v10  ;;  %v1133_v48 = vrot.slane %v1130_v42, 4  ;;  %v1156_v49 = vperm.slane %v1148_v46, %v1924_v10  ;;  %1257 = vmatpush.bf16.msra.mxu1 %v1578_v31 }
 0x476   : > { %v1146_v50 = vsel %vm584_vm5, %v1145_v45, %v1139_v28 }
 0x477   : > { %v1131_v51 = vrot.slane %v1126_v47, 4  ;;  %v1134_v52 = vsel %vm584_vm5, 0, %v1133_v48  ;;  %v1152_v53 = vperm.slane %v1146_v50, %v1924_v10  ;;  %v1159_v55 = vrot.slane %v1156_v49, 4  ;;  %v1580_v50 = vld [vmem:[%s2175_s9] sm:$0xff] }
 0x478   : > { %v1166_v59 = vrot.slane %v1134_v52, 4  ;;  %v1161_v60 = vsel %vm584_vm5, %v1133_v48, %v1126_v47 }
 0x479   : > { %v1132_v56 = vsel %vm584_vm5, 0, %v1131_v51  ;;  %v1157_v57 = vrot.slane %v1152_v53, 4  ;;  %v1160_v58 = vsel %vm584_vm5, 0, %v1159_v55  ;;  %v1180_v35 = vsel %vm584_vm5, %v1159_v55, %v1152_v53  ;;  %v1589_v51 = vld [vmem:[%s2177_s11 + $0x38] sm:$0xff]  ;;  %v1588_v55 = vld [vmem:[%s2177_s11 + $0x30] sm:$0xff] }
 0x47a   : > { %v1167_v61 = vsel %vm584_vm5, %v1166_v59, %v1132_v56  ;;  %v1185_v62 = vrot.slane %v1160_v58, 4  ;;  %v1165_v4 = vperm.slane %v1161_v60, %v1918_v54  ;;  %v1184_v11 = vperm.slane %v1180_v35, %v1918_v54  ;;  %1404 = vmatpush.bf16.msra.mxu3 %v1589_v51  ;;  %v1587_v56 = vld [vmem:[%s2177_s11 + $0x28] sm:$0xff] }
 0x47b   : > { %v1158_v63 = vsel %vm584_vm5, 0, %v1157_v57  ;;  %v1171_v1 = vperm.slane %v1167_v61, %v1918_v54  ;;  %v1586_v57 = vld [vmem:[%s2177_s11 + $0x20] sm:$0xff] }
 0x47c   : > { %v1186_v2 = vsel %vm584_vm5, %v1185_v62, %v1158_v63  ;;  %v1584_v63 = vld [vmem:[%s2177_s11 + $0x10] sm:$0xff] }
 0x47d   : > { %v1172_v5 = vrot.slane %v1171_v1, 4  ;;  %v1190_v9 = vperm.slane %v1186_v2, %v1918_v54  ;;  %v1650_v2 = vld [vmem:[%s2173_s7] ss:$0 sm:$0xff] }
 0x47e   : > { %1405 = vmatpush.bf16.msra.mxu3 %v1588_v55 }
 0x47f   : > { %v1173_v3 = vsel %vm584_vm5, %v1172_v5, %v1165_v4  ;;  %v1191_v12 = vrot.slane %v1190_v9, 4  ;;  %v1651_v9 = vld [vmem:[%s2174_s8] ss:$0 sm:$0xff] }
 0x480   : > { %v1177_v13 = vperm.slane %v1173_v3, %v1924_v10 }
 0x481   : > { %v1192_v14 = vsel %vm584_vm5, %v1191_v12, %v1184_v11 }
 0x482   : > { %v1196_v15 = vperm.slane %v1192_v14, %v1924_v10  ;;  %v1178_v16 = vrot.slane %v1177_v13, 4  ;;  %v1202_v17 = vshrl.u32 %v1177_v13, 16  ;;  %1406 = vmatpush.bf16.msra.mxu3 %v1587_v56  ;;  %v1582_v14 = vld [vmem:[%s2177_s11] sm:$0xff] }
 0x484   : > { %v1203_v18 = vshrl.u32 %v1196_v15, 16  ;;  %v1179_v19 = vsel %vm584_vm5, 0, %v1178_v16  ;;  %v1197_v20 = vrot.slane %v1196_v15, 4  ;;  %v1201_v21 = vpack.i.b16 %v1196_v15, %v1177_v13  ;;  %v1583_v13 = vld [vmem:[%s2177_s11 + $0x8] sm:$0xff]  ;;  %v1652_v15 = vld [vmem:[%s2176_s10] ss:$0 sm:$0xff] }
 0x485   : > { %v1208_v24 = vshrl.u32 %v1179_v19, 16 }
 0x486   : > { %v1204_v22 = vpack.i.b16 %v1203_v18, %v1202_v17  ;;  %v1198_v23 = vsel %vm584_vm5, 0, %v1197_v20  ;;  %vm1226_vm5 = vcmask 130048   ;;  %1407 = vmatpush.bf16.msra.mxu3 %v1586_v57 }
 0x487   : > { %v1207_v6 = vpack.i.b16 %v1198_v23, %v1179_v19  ;;  %v1209_v54 = vshrl.u32 %v1198_v23, 16 }
 0x488   : > { %v1211_v25 = vunpack.c.l.b16 %v1204_v22 }
 0x489   : > { %v1215_v26 = vunpack.c.l.b16 %v1207_v6  ;;  %v1210_v27 = vpack.i.b16 %v1209_v54, %v1208_v24 }
 0x48a   : > { %v1212_v7 = vpack.c.b16 %v1211_v25, %v1211_v25 }
 0x48b   : > { %v1216_v28 = vpack.c.b16 %v1215_v26, %v1215_v26  ;;  %v1219_v29 = vunpack.c.l.b16 %v1210_v27 }
 0x48c   : > { %1213 = vrot.lane.b32.xlu0 %v1212_v7, %s1754_s22 }
 0x48d   : > { %1217 = vrot.lane.b32.xlu1 %v1216_v28, %s1755_s23  ;;  %v1220_v10 = vpack.c.b16 %v1219_v29, %v1219_v29  ;;  %s431_s23 = scalar_lea.vmem [#allocation2], %s1503_s15  ;;  %s1696_s15 = scalar_lea.hbm %s2179_s13, 16 }
 0x48e   : > { %p1698_p1 = scmp.lt.s32.totalorder %s1696_s15, %s1692_s0 }
 0x48f   : > { %1221 = vrot.lane.b32.xlu2 %v1220_v10, %s1756_s24  ;;  %s1437_s24 = sshll.u32 %s431_s23, 4  ;;  %s1438_s24 = int_to_ptr.vmem [resolvable:$true] %s1437_s24 }
 0x490   : > { %p1699_p2 = por %p1698_p1, %p1697_p0 }
 0x492   : > { %p1700_p3 = pnand %p1699_p2, %p1695_p13 }
 0x4e9   : > { %v1222_v36 = vpop.permute.xlu2 %1221 }
 0x4fe   : > { %v1214_v32 = vpop.permute.xlu0 %1213 }
 0x4ff   : > { %v1225_v33 = vsel %vm820_vm6, %v1201_v21, %v1214_v32  ;;  %v1218_v34 = vpop.permute.xlu1 %1217  ;;  %v1653_v21 = vld [vmem:[%s2178_s12] ss:$0 sm:$0xff] }
 0x500   : > { %v1228_v37 = vsel %vm1226_vm5, %v1225_v33, %v1218_v34 }
 0x501   : > { %v1231_v38 = vsel %vm1229_vm12, %v1228_v37, %v1222_v36 }
 0x502   : > { %1530 = vmatmul.msk.bf16.vlgmr.msra.gmra.mxu1 %vm440_vm0, %v1231_v38 }
 0x57f   : > { %v1259_v40 = vpop.f32.mrf.mxu1 }
 0x580   : > { %v1263_v41 = vadd.f32 %v1259_v40, %v1880_v0  ;;  %v1581_v0 = vld [vmem:[%s2175_s9 + $0x8] sm:$0xff] }
 0x581   : > { %1331 = vmatpush.bf16.msra.mxu2 %v1581_v0 }
 0x582   : > { %v2081_v42 = vadd.f32 %v1649_v39, %v1263_v41 }
 0x584   : > { %v1271_v43 = vsel %vm440_vm0, %v2081_v42, 0.0 }
 0x585   : > { %1272 = vadd.xlane.f32.xlu0 %v1271_v43  ;;  %1332 = vmatpush.bf16.msra.mxu2 %v1580_v50 }
 0x587   : > { %v1261_v44 = vpop.f32.mrf.mxu1 }
 0x5f8   : > { %v1273_v45 = vpop.xlane.xlu0 %1272 }
 0x5f9   : > { %v1274_v46 = vmul.f32 %v1273_v45, %v1884_v8 }
 0x5fb   : > { %v1275_v47 = vsub.f32 %v2081_v42, %v1274_v46 }
 0x5fd   : > { %v1276_v48 = vmul.f32 %v1275_v47, %v1275_v47 }
 0x5ff   : > { %v1277_v49 = vsel %vm440_vm0, %v1276_v48, 0.0 }
 0x600   : > { %1278 = vadd.xlane.f32.xlu1 %v1277_v49 }
 0x673   : > { %v1279_v52 = vpop.xlane.xlu1 %1278 }
 0x674   : > { %v1280_v53 = vmul.f32 %v1279_v52, %v1884_v8  ;;  %v1585_v8 = vld [vmem:[%s2177_s11 + $0x18] sm:$0xff] }
 0x675   : > { %1408 = vmatpush.bf16.msra.mxu3 %v1585_v8 }
 0x676   : > { %v1281_v59 = vadd.f32 1e-05, %v1280_v53 }
 0x678   : > { %1674 = vrsqrt.f32 %v1281_v59  ;;  %vm1288_vm13 = vweird.f32 %v1281_v59 }
 0x679   : > { %1409 = vmatpush.bf16.msra.mxu3 %v1584_v63 }
 0x67d   : > { %1410 = vmatpush.bf16.msra.mxu3 %v1583_v13 }
 0x67e   : > { %v1675_v58 = vpop.eup %1674 }
 0x67f   : > { %v1283_v60 = vmul.f32 %v1675_v58, %v1281_v59  ;;  %vm1289_vm6 = vweird.f32 %v1675_v58 }
 0x680   : > { %vm1290_vm14 = vmor %vm1288_vm13, %vm1289_vm6 }
 0x681   : > { %v1284_v61 = vmul.f32 %v1675_v58, %v1283_v60  ;;  %1411 = vmatpush.bf16.msra.mxu3 %v1582_v14 }
 0x683   : > { %v1285_v62 = vmul.f32 0.5, %v1284_v61 }
 0x685   : > { %v1286_v1 = vsub.f32 1.5, %v1285_v62 }
 0x687   : > { %v1287_v35 = vmul.f32 %v1675_v58, %v1286_v1 }
 0x689   : > { %v1291_v4 = vsel %vm1290_vm14, %v1675_v58, %v1287_v35 }
 0x68a   : > { %v1292_v5 = vmul.f32 %v1291_v4, %v1275_v47 }
 0x68c   : > { %v1296_v3 = vmul.f32 %v1650_v2, %v1292_v5 }
 0x68e   : > { %v1300_v11 = vadd.f32 %v1651_v9, %v1296_v3 }
 0x690   : > { %v1305_v12 = vpack.c.bf16 %v1300_v11, %v1300_v11 }
 0x692   : > { %1539 = vmatmul.msk.bf16.vlgmr.msra.gmra.mxu2 %vm440_vm0, %v1305_v12 }
 0x715   : > { %v1334_v16 = vpop.f32.mrf.mxu2 }
 0x716   : > { %v1335_v17 = vadd.f32 %v1652_v15, %v1334_v16 }
 0x718   : > { %v1338_v18 = vmax.f32 %v1335_v17, 0.0 }
 0x71a   : > { %v1355_v19 = vpack.c.bf16 %v1338_v18, %v1338_v18 }
 0x71c   : > { %1412 = vmatmul.bf16.vlgmr.msra.gmra.mxu3 %v1355_v19 }
 0x71d   : > { %v1336_v20 = vpop.f32.mrf.mxu2 }
 0x79f   : > { %v1413_v22 = vpop.f32.mrf.mxu3 }
 0x7a0   : > { %v1417_v23 = vadd.f32 %v1413_v22, %v2081_v42 }
 0x7a2   : > { %v1422_v6 = vadd.f32 %v1653_v21, %v1417_v23 }
 0x7a4   : > { %1423 = vst.msk [vmem:[%s431_s23] sm:$0xff] %vm440_vm0, %v1422_v6 }
 0x7a5   : > { %1703 = shalt.err (!%p1700_p3)
}
 0x7a6   : > { %1590 = dma.vmem_to_hbm [thread:$0]  (%p1865_p5), %s1438_s24, 128, %s1440_s2, %s1425_s29  }
 0x7a7   : > { %v1415_v24 = vpop.f32.mrf.mxu3 }
 0x7a8 PF: > { %p1596_p4 = scmp.ge.s32.totalorder %s1738_s28, 2  ;;  %s1451_s30 = sand.u32 1, %s1726_s25  }
 0x7a9   : > { %s1452_s22 = scalar_lea.sflag [#allocation3], %s1451_s30 }
 0x7aa   : > { %p1593_p7 = pnand %p1596_p4, %p1869_p6 }
 0x7ac   : > { %p1594_p8 = pneg %p1593_p7 }
 0x7ae   : > { %1721 = dma.done.wait (%p1594_p8), %s1452_s22, 128  }
 0x7af   : > { %1723 = vsyncadd (%p1594_p8), %s1452_s22, 4294967168  ;;  %p23_p9 = scmp.ge.s32.totalorder %s1852_s14, 4   ;;  %s2190_s25 = smov %s1730_s26 }
 0x7b0   : > { %s2191_s26 = smov %s1734_s27  ;;  %s2192_s27 = smov %s1863_s17 }
 0x7b1   : > { %s2193_s28 = smov %s1852_s14  ;;  %25 = sbr.rel (!%p23_p9) target bundleno = 8 (0x8), region = 107 }
 0x7b6   :  { %1458 = vsyncpa [#allocation3], 1 }
 0x7b7   :  { %1460 = vsyncpa [#allocation3 + $0x1], 1 }

</bundles_post_ra>
